<compile_context>
chip_gen: v7x
topology: tpu7x:2x2x1
jax: 0.10.0
libtpu: 0.0.40
codegen_flags: <defaults>
</compile_context>

<pallas_src>
import functools

import jax
import jax.numpy as jnp
from jax.experimental import pallas as pl
from jax.experimental.pallas import tpu as pltpu


# ----------------------------------------------------------------------------
# ap2 helpers
# ----------------------------------------------------------------------------
def _ap2_jax(v):
    """ap2 via log2/exp2 (mirrors the PyTorch formula); used only for O(C) params."""
    a = jnp.abs(v)
    safe = jnp.where(a > 0, a, jnp.ones_like(a))
    p = jnp.exp2(jnp.round(jnp.log2(safe)))
    return jnp.where(a > 0, jnp.sign(v) * p, jnp.zeros_like(v))


_SQRT2_MANT = 0x3504F3  # mantissa bits of sqrt(2) in float32


def _x_ap2_x(ctr):
    """ctr * ap2(ctr) == |ctr| * 2^round(log2|ctr|) via exponent-bit tricks.

    No sign/select path and no transcendentals.  ap2(0) == 0 falls out because
    the exponent field of 0.0 is 0 (subnormals also flush to 0, negligible).
    """
    a = jnp.abs(ctr)
    bits = pltpu.bitcast(a, jnp.int32)              # sign bit already cleared
    exp = bits >> 23
    mant = bits & jnp.int32(0x007FFFFF)
    exp = exp + (mant >= jnp.int32(_SQRT2_MANT)).astype(jnp.int32)
    pow2 = pltpu.bitcast(exp << 23, jnp.float32)
    return a * pow2


# ----------------------------------------------------------------------------
# Kernels
# ----------------------------------------------------------------------------
def _sum_kernel(hw, tile, n_inner, masked, x_ref, acc_ref):
    """acc[row-block] += per-lane-group partial sums of x over this tile."""
    @pl.when(pl.program_id(2) == 0)
    def _init():
        acc_ref[...] = jnp.zeros_like(acc_ref)

    rows = x_ref.shape[0]
    if tile % 128 != 0:
        # Tiny non-128-multiple H*W: single full-row block, cross-lane reduce.
        acc_ref[:, 0:1] += jnp.sum(x_ref[...].astype(jnp.float32), axis=-1,
                                   keepdims=True)
        return

    n_chunks = tile // 128
    k = min(4, n_chunks)                 # independent accumulators (ILP)
    if masked:
        col0 = (pl.program_id(1) * n_inner + pl.program_id(2)) * tile
        lane = jax.lax.broadcasted_iota(jnp.int32, (rows, 128), 1)

    parts = [None] * k
    for c in range(n_chunks):
        xk = x_ref[:, c * 128:(c + 1) * 128].astype(jnp.float32)
        if masked:
            xk = jnp.where(lane < hw - (col0 + c * 128), xk, 0.0)
        i = c % k
        parts[i] = xk if parts[i] is None else parts[i] + xk

    s = parts[0]
    for p in parts[1:]:
        if p is not None:
            s = s + p
    acc_ref[...] += s


def _var_kernel(hw, tile, n_inner, masked, x_ref, mean_ref, acc_ref):
    """acc[row-block] += partial sums of ctr*ap2(ctr), ctr = x - round(mean)."""
    @pl.when(pl.program_id(2) == 0)
    def _init():
        acc_ref[...] = jnp.zeros_like(acc_ref)

    rows = x_ref.shape[0]
    if tile % 128 != 0:
        ctr = x_ref[...].astype(jnp.float32) - mean_ref[...]
        acc_ref[:, 0:1] += jnp.sum(_x_ap2_x(ctr), axis=-1, keepdims=True)
        return

    n_chunks = tile // 128
    k = min(4, n_chunks)
    m = jnp.broadcast_to(mean_ref[...], (rows, 128))          # hoisted broadcast
    if masked:
        col0 = (pl.program_id(1) * n_inner + pl.program_id(2)) * tile
        lane = jax.lax.broadcasted_iota(jnp.int32, (rows, 128), 1)

    parts = [None] * k
    for c in range(n_chunks):
        ctr = x_ref[:, c * 128:(c + 1) * 128].astype(jnp.float32) - m
        if masked:
            ctr = jnp.where(lane < hw - (col0 + c * 128), ctr, 0.0)
        term = _x_ap2_x(ctr)
        i = c % k
        parts[i] = term if parts[i] is None else parts[i] + term

    s = parts[0]
    for p in parts[1:]:
        if p is not None:
            s = s + p
    acc_ref[...] += s


def _norm_kernel(x_ref, mean_ref, scale_ref, bias_ref, y_ref):
    """y = scale * (x - round(mean)) + bias, fully streamed (1R + 1W)."""
    x = x_ref[...].astype(jnp.float32)
    y = scale_ref[...] * (x - mean_ref[...]) + bias_ref[...]
    y_ref[...] = y.astype(y_ref.dtype)


# ----------------------------------------------------------------------------
# Tiling selection (generation aware)
# ----------------------------------------------------------------------------
def _vmem_capacity_bytes():
    try:
        cap = getattr(pltpu.get_tpu_info(), "vmem_capacity_bytes", None)
        if cap:
            return int(cap)
    except Exception:
        pass
    return 64 << 20   # conservative default: v7x per-TensorCore VMEM


def _ceil_div(a, b):
    return -(-a // b)


def _choose_tiling(n_rows, hw, itemsize):
    """Returns (row_block, lane_tile, n_row_blocks, n_outer, n_inner, masked, vmem_limit)."""
    vmem_cap = _vmem_capacity_bytes()
    vmem_limit = min((vmem_cap * 3) // 4, 96 << 20)
    x_budget = max(64 << 10, vmem_limit // 8)     # bytes per x block (leaves room
                                                  # for double-buffered in+out)

    # --- lane tile (last dim): 128-multiple, or the full row for tiny H*W ---
    if hw % 128 == 0:
        tile = 128
        while (tile * 2 <= min(hw, 8192) and hw % (tile * 2) == 0
               and 8 * (tile * 2) * itemsize <= x_budget):
            tile *= 2
        masked = False
    elif hw < 1024:
        tile = hw                       # full-row block (legal: equals array dim)
        masked = False
    else:
        tile = 128
        while tile * 2 <= min(hw, 8192) and 8 * (tile * 2) * itemsize <= x_budget:
            tile *= 2
        masked = (hw % tile != 0)
    n_tiles = _ceil_div(hw, tile)

    # --- row block (second-to-last dim): multiple of 8, or the full rows ---
    max_rows = max(8, x_budget // (tile * itemsize))
    if n_rows <= 8:
        rb = n_rows
    else:
        probe, best = 8, None
        while probe <= min(n_rows, max_rows):
            if n_rows % probe == 0:
                best = probe
            probe *= 2
        if best is not None:
            rb = best
        else:                            # ragged rows: last block clipped
            rb = 8
            while rb * 2 <= min(_ceil_div(n_rows, 8) * 8, max_rows):
                rb *= 2
    n_rblocks = _ceil_div(n_rows, rb)

    # --- megacore: if the row axis has a single block, split the tile axis so
    #     the reduction passes still expose a parallel grid dimension. ---
    n_outer = 2 if (n_rblocks == 1 and n_tiles % 2 == 0 and n_tiles >= 4) else 1
    n_inner = n_tiles // n_outer
    return rb, tile, n_rblocks, n_outer, n_inner, masked, vmem_limit


# ----------------------------------------------------------------------------
# Forward pass
# ----------------------------------------------------------------------------
def binary_batch_norm(x_nchw, running_mean, running_var, weight1, bias1,
                      momentum=0.1, eps=1e-5, training=True):
    """Returns (y_nchw, new_running_mean, new_running_var)."""
    N, C, H, W = x_nchw.shape
    HW = H * W
    R = N * C
    L = N * HW
    x2 = x_nchw.reshape(R, HW)           # free view: row r = n*C + c
    out_dtype = x2.dtype
    itemsize = jnp.dtype(out_dtype).itemsize

    rb, tile, n_r, n_outer, n_inner, masked, vmem_limit = _choose_tiling(R, HW, itemsize)
    r_pad = n_r * rb
    grid = (n_r, n_outer, n_inner)

    x_spec = pl.BlockSpec((rb, tile), lambda r, to, ti: (r, to * n_inner + ti))
    col_spec = pl.BlockSpec((rb, 1), lambda r, to, ti: (r, 0))
    acc_spec = pl.BlockSpec((rb, 128), lambda r, to, ti: (r, to))
    acc_shape = jax.ShapeDtypeStruct((r_pad, n_outer * 128), jnp.float32)

    reduce_params = pltpu.CompilerParams(
        dimension_semantics=("parallel", "parallel", "arbitrary"),
        vmem_limit_bytes=vmem_limit)
    map_params = pltpu.CompilerParams(
        dimension_semantics=("parallel", "parallel", "parallel"),
        vmem_limit_bytes=vmem_limit)

    def _per_row(per_channel):
        """(C,) per-channel vector -> padded (r_pad, 1) f32 per-row column."""
        rows = jnp.tile(per_channel.astype(jnp.float32), N)     # row n*C+c -> [c]
        rows = jnp.pad(rows, (0, r_pad - R))
        return rows.reshape(r_pad, 1)

    run_mean = jnp.asarray(running_mean, jnp.float32)
    run_var = jnp.asarray(running_var, jnp.float32)

    if training:
        # Pass 1: per-row lane-group partial sums of x.
        partials = pl.pallas_call(
            functools.partial(_sum_kernel, HW, tile, n_inner, masked),
            grid=grid,
            in_specs=[x_spec],
            out_specs=acc_spec,
            out_shape=acc_shape,
            compiler_params=reduce_params,
        )(x2)
        row_sums = partials[:R].sum(axis=1)                     # (R,)
        batch_mean = row_sums.reshape(N, C).sum(axis=0) / L
        run_mean = (1.0 - momentum) * run_mean + momentum * batch_mean

    mean_used = jnp.round(run_mean)                             # self.mean.round()
    mean_col = _per_row(mean_used)

    if training:
        # Pass 2: per-row partial sums of ctr * ap2(ctr).
        partials2 = pl.pallas_call(
            functools.partial(_var_kernel, HW, tile, n_inner, masked),
            grid=grid,
            in_specs=[x_spec, col_spec],
            out_specs=acc_spec,
            out_shape=acc_shape,
            compiler_params=reduce_params,
        )(x2, mean_col)
        row_sums2 = partials2[:R].sum(axis=1)
        batch_var = row_sums2.reshape(N, C).sum(axis=0) / L
        run_var = (1.0 - momentum) * run_var + momentum * batch_var

    # O(C) parameter math in plain JAX. ap2 values are exact powers of two, so
    # folding ap2(w1) * ap2(1/sqrt(var+eps)) into a single per-channel scale is
    # bit-exact with the reference association.
    inv_std = _ap2_jax(1.0 / jnp.sqrt(run_var + eps))
    scale_col = _per_row(_ap2_jax(jnp.asarray(weight1, jnp.float32)) * inv_std)
    bias_col = _per_row(_ap2_jax(jnp.asarray(bias1, jnp.float32)))

    # Pass 3: normalize + affine, streamed and fully parallel.
    y2 = pl.pallas_call(
        _norm_kernel,
        grid=grid,
        in_specs=[x_spec, col_spec, col_spec, col_spec],
        out_specs=x_spec,
        out_shape=jax.ShapeDtypeStruct((R, HW), out_dtype),
        compiler_params=map_params,
    )(x2, mean_col, scale_col, bias_col)

    return y2.reshape(N, C, H, W), run_mean, run_var


# ----------------------------------------------------------------------------
# Reference + test
# ----------------------------------------------------------------------------
def _reference(x, mean, var, w1, b1, momentum=0.1, eps=1e-5, training=True):
    """Pure-JAX reference mirroring the PyTorch forward."""
    C = x.shape[1]
    x2d = jnp.transpose(x, (1, 0, 2, 3)).reshape(C, -1)
    if training:
        mean = (1 - momentum) * mean + momentum * jnp.mean(x2d, axis=1)
    ctr = x - jnp.round(mean)[None, :, None, None]
    if training:
        ctr2d = jnp.transpose(ctr, (1, 0, 2, 3)).reshape(C, -1)
        var = (1 - momentum) * var + momentum * jnp.mean(ctr2d * _ap2_jax(ctr2d), axis=1)
    xn = ctr * _ap2_jax(1.0 / jnp.sqrt(var + eps))[None, :, None, None]
    y = _ap2_jax(w1)[None, :, None, None] * xn + _ap2_jax(b1)[None, :, None, None]
    return y, mean, var


if __name__ == "__main__":
    N, C, H, W = 2, 4, 16, 16
    key = jax.random.PRNGKey(0)
    kx, kw = jax.random.split(key)

    x = jax.random.normal(kx, (N, C, H, W), dtype=jnp.float32) * 2.0 + 0.3

    # Deterministic parameter init (mirrors reset_parameters()):
    running_mean = jnp.zeros((C,), jnp.float32)                 # self.mean.zero_()
    running_var = jnp.ones((C,), jnp.float32)                   # self.var.fill_(1)
    weight1 = jax.random.uniform(kw, (C,), jnp.float32) - 0.5   # uniform_() - 0.5
    bias1 = jnp.zeros((C,), jnp.float32)                        # bias1.zero_()

    y, new_mean, new_var = binary_batch_norm(
        x, running_mean, running_var, weight1, bias1,
        momentum=0.1, eps=1e-5, training=True)
    jax.block_until_ready((y, new_mean, new_var))

    y_ref, mean_ref, var_ref = _reference(
        x, running_mean, running_var, weight1, bias1,
        momentum=0.1, eps=1e-5, training=True)

    assert y.shape == (N, C, H, W)
    assert jnp.allclose(y, y_ref, rtol=1e-5, atol=1e-5)
    assert jnp.allclose(new_mean, mean_ref, rtol=1e-5, atol=1e-5)
    assert jnp.allclose(new_var, var_ref, rtol=1e-5, atol=1e-5)

    print("KERNEL_OK")
</pallas_src>

<mosaic_0001>
module attributes {stable_mosaic.version = 11 : i64} {
  func.func @_sum_kernel(%arg0: i32, %arg1: i32, %arg2: i32, %arg3: memref<8x256xf32, #tpu.memory_space<vmem>>, %arg4: memref<8x128xf32, #tpu.memory_space<vmem>>) attributes {dimension_semantics = [#tpu.dimension_semantics<parallel>, #tpu.dimension_semantics<parallel>, #tpu.dimension_semantics<arbitrary>], iteration_bounds = array<i64: 1, 1, 1>, scalar_prefetch = 0 : i64, scratch_operands = 0 : i64, tpu.core_type = #tpu.core_type<tc>, window_params = [{transform_indices = @transform_0, window_bounds = array<i64: 8, 256>}, {transform_indices = @transform_1, window_bounds = array<i64: 8, 128>}]} {
    %c0_i32 = arith.constant 0 : i32
    %0 = arith.cmpi eq, %arg2, %c0_i32 : i32
    %1 = arith.extui %0 : i1 to i32
    %c0_i32_0 = arith.constant 0 : i32
    %2 = arith.cmpi ne, %1, %c0_i32_0 : i32
    scf.if %2 {
      %cst = arith.constant 0.000000e+00 : f32
      %9 = vector.broadcast %cst : f32 to vector<8x128xf32>
      %c0_7 = arith.constant 0 : index
      %c0_8 = arith.constant 0 : index
      %10 = vector.load %arg4[%c0_7, %c0_8] : memref<8x128xf32, #tpu.memory_space<vmem>>, vector<8x128xf32>
      tpu.vector_store %arg4[%c0_7, %c0_8], %9 {strides = array<i32>} : memref<8x128xf32, #tpu.memory_space<vmem>>, vector<8x128xf32>,
    } else {
    }
    %c0 = arith.constant 0 : index
    %c0_1 = arith.constant 0 : index
    %3 = vector.load %arg3[%c0, %c0_1] : memref<8x256xf32, #tpu.memory_space<vmem>>, vector<8x128xf32>
    %c0_2 = arith.constant 0 : index
    %c128 = arith.constant 128 : index
    %4 = vector.load %arg3[%c0_2, %c128] : memref<8x256xf32, #tpu.memory_space<vmem>>, vector<8x128xf32>
    %5 = arith.addf %3, %4 : vector<8x128xf32>
    %c0_3 = arith.constant 0 : index
    %c0_4 = arith.constant 0 : index
    %6 = vector.load %arg4[%c0_3, %c0_4] : memref<8x128xf32, #tpu.memory_space<vmem>>, vector<8x128xf32>
    %7 = arith.addf %6, %5 : vector<8x128xf32>
    %c0_5 = arith.constant 0 : index
    %c0_6 = arith.constant 0 : index
    %8 = vector.load %arg4[%c0_5, %c0_6] : memref<8x128xf32, #tpu.memory_space<vmem>>, vector<8x128xf32>
    tpu.vector_store %arg4[%c0_5, %c0_6], %7 {strides = array<i32>} : memref<8x128xf32, #tpu.memory_space<vmem>>, vector<8x128xf32>,
    return
  }
  func.func @transform_0(%arg0: i32, %arg1: i32, %arg2: i32) -> (i32, i32) {
    %c1_i32 = arith.constant 1 : i32
    %0 = arith.muli %arg1, %c1_i32 : i32
    %1 = arith.addi %0, %arg2 : i32
    %c0_i32 = arith.constant 0 : i32
    return %arg0, %1 : i32, i32
  }
  func.func @transform_1(%arg0: i32, %arg1: i32, %arg2: i32) -> (i32, i32) {
    %c0_i32 = arith.constant 0 : i32
    return %arg0, %arg1 : i32, i32
  }
}

</mosaic_0001>

<bundles_post_ra>
// kernel: tpu_custom_call.1
= control target key start
LH: loop header
LB: loop body
LE: loop exit
PB: predicated region body
PF: predicated region fallthrough
CT: control target
= control target key end

     0   :  { %6 = vsyncpa [#allocation3], 0  ;;  %s140_s0 = inlined_call_operand.hbm [shape: f32[8,256], index: 0, kind: input, shape index: {}]   ;;  %s141_s1 = inlined_call_operand.hbm [shape: f32[8,128], index: 1, kind: output, shape index: {}]  }
   0x1   :  { %7 = vsyncpa [#allocation4], 0  ;;  %s104_s6 = smov [#allocation2]   ;;  %s56_s10 = scalar_lea.hbm %s140_s0, 256 }
   0x2   :  { %s18_s7 = sshll.u32 %s104_s6, 4  ;;  %p57_p0 = scmp.ne.s32.totalorder %s140_s0, %s56_s10  ;;  %s19_s7 = int_to_ptr.vmem [resolvable:$true] %s18_s7 }
   0x3   :  { %p60_p1 = scmp.lt.u32.totalorder %s56_s10, %s140_s0 }
   0x5   :  { %p62_p2 = pnand %p60_p1, %p57_p0 }
   0x7   :  { %65 = shalt.err (!%p62_p2)
}
   0x8   :  { %s66_s15 = scalar_lea.vmem %s19_s7, 256  ;;  %p71_p4 = scmp.lt.s32.totalorder %s19_s7, %s19_s7 }
   0x9   :  { %p67_p3 = scmp.ne.s32.totalorder %s19_s7, %s66_s15  ;;  %p72_p5 = scmp.lt.s32.totalorder %s66_s15, %s66_s15 }
   0xb   :  { %p73_p6 = por %p72_p5, %p71_p4 }
   0xd   :  { %p74_p7 = pnand %p73_p6, %p67_p3 }
   0xf   :  { %77 = shalt.err (!%p74_p7)
}
  0x10   :  { %21 = dma.hbm_to_vmem [thread:$0]  %s140_s0, 256, %s19_s7, [#allocation3]  }
  0x11   :  { %100 = dma.done.wait [#allocation3], 256  }
  0x12   :  { %101 = vsyncadd [#allocation3], 4294967040  ;;  %v32_v0 = vld [vmem:[#allocation2] sm:$0xff]  ;;  %v33_v1 = vld [vmem:[#allocation2 + $0x8] sm:$0xff]  ;;  %s105_s18 = smov [#allocation5]  }
  0x13   :  { %s44_s19 = sshll.u32 %s105_s18, 4  ;;  %v34_v2 = vadd.f32 %v33_v1, %v32_v0  ;;  %s45_s19 = int_to_ptr.vmem [resolvable:$true] %s44_s19 }
  0x14   :  { %s78_s20 = scalar_lea.vmem %s45_s19, 128  ;;  %p83_p9 = scmp.lt.s32.totalorder %s45_s19, %s45_s19 }
  0x15   :  { %37 = vst [vmem:[#allocation5] sm:$0xff] %v34_v2  ;;  %p79_p8 = scmp.ne.s32.totalorder %s45_s19, %s78_s20  ;;  %p84_p10 = scmp.lt.s32.totalorder %s78_s20, %s78_s20 }
  0x17   :  { %p85_p11 = por %p84_p10, %p83_p9 }
  0x19   :  { %p86_p12 = pnand %p85_p11, %p79_p8 }
  0x1b   :  { %89 = shalt.err (!%p86_p12)
}
  0x1c   :  { %s90_s0 = scalar_lea.hbm %s141_s1, 128 }
  0x1d   :  { %p91_p13 = scmp.ne.s32.totalorder %s141_s1, %s90_s0  ;;  %p94_p0 = scmp.lt.u32.totalorder %s90_s0, %s141_s1 }
  0x1f   :  { %p96_p1 = pnand %p94_p0, %p91_p13 }
  0x21   :  { %99 = shalt.err (!%p96_p1)
}
  0x22   :  { %47 = dma.vmem_to_hbm [thread:$0]  %s45_s19, 128, %s141_s1, [#allocation4]  }
  0x23   :  { %102 = dma.done.wait [#allocation4], 128  }
  0x24   :  { %103 = vsyncadd [#allocation4], 4294967168 }
  0x25   :  { %51 = vsyncpa [#allocation3], 1 }
  0x26   :  { %52 = vsyncpa [#allocation4], 1 }

</bundles_post_ra>
